<compile_context>
chip_gen: v7x
topology: tpu7x:2x2x1
jax: 0.10.0
libtpu: 0.0.40
codegen_flags: <defaults>
</compile_context>

<pallas_src>
import functools

import jax
import jax.numpy as jnp
from jax.experimental import pallas as pl
from jax.experimental.pallas import tpu as pltpu

LANE = 128


def _round_up(x, m):
    return ((x + m - 1) // m) * m


# ----------------------------------------------------------------------------
# Pallas kernel: fused mask apply + FIR average + encode/decode residual math.
#   wl/wr/refer blocks: (1, C, TILE_HW)   mask blocks: (1, 1, TILE_HW)
# ----------------------------------------------------------------------------
def _fuse_kernel(is_encode, params_ref, wl_ref, wr_ref, ml_ref, mr_ref,
                 refer_ref, out_ref):
    alpha = params_ref[0]            # SMEM scalar
    inv_alpha = params_ref[1]        # 1/alpha computed once on host side

    ml = ml_ref[...]                 # (1, 1, T) -> broadcasts over C in-reg
    mr = mr_ref[...]
    predict1 = (wl_ref[...] * ml + wr_ref[...] * mr) * 0.5

    if is_encode:                    # compile-time branch
        # H = (refer - predict1) * alpha_level
        out_ref[...] = (refer_ref[...] - predict1) * alpha
    else:
        # H = refer / alpha_level + predict1   (divide -> scalar reciprocal)
        out_ref[...] = refer_ref[...] * inv_alpha + predict1


def fuse_pallas(warped_l, warped_r, mask_l, mask_r, refer, alpha_level,
                is_encode):
    N, C, H, W = refer.shape
    HW = H * W

    # Lane-dense tile along the flattened spatial dim.  Target ~0.5 MiB per
    # full-C f32 operand block: 6 double-buffered operands then sit well under
    # the 16 MiB scoped-VMEM default on v5e (and 32 MiB on v6e/v7x), while a
    # (N, n_tiles) grid keeps enough parallel blocks to feed both v7x cores.
    target_hw = max(LANE, ((512 * 1024) // (4 * C)) // LANE * LANE)
    if HW <= target_hw:
        tile_hw = _round_up(HW, LANE)
    else:
        tile_hw = target_hw
    hw_pad = _round_up(HW, tile_hw)
    n_tiles = hw_pad // tile_hw

    def flat_full(a):                # (N, C, H, W) -> (N, C, hw_pad)
        a = jnp.asarray(a, jnp.float32).reshape(N, C, HW)
        if hw_pad != HW:
            a = jnp.pad(a, ((0, 0), (0, 0), (0, hw_pad - HW)))
        return a

    def flat_mask(m):                # (N, 1, H, W) -> (N, 1, hw_pad)
        m = jnp.asarray(m, jnp.float32).reshape(N, 1, HW)
        if hw_pad != HW:
            m = jnp.pad(m, ((0, 0), (0, 0), (0, hw_pad - HW)))
        return m

    alpha = jnp.asarray(alpha_level, jnp.float32)
    params = jnp.stack([alpha, 1.0 / alpha])          # SMEM scalars

    full_spec = pl.BlockSpec((1, C, tile_hw), lambda n, t: (n, 0, t))
    mask_spec = pl.BlockSpec((1, 1, tile_hw), lambda n, t: (n, 0, t))

    out = pl.pallas_call(
        functools.partial(_fuse_kernel, is_encode),
        out_shape=jax.ShapeDtypeStruct((N, C, hw_pad), jnp.float32),
        grid=(N, n_tiles),
        in_specs=[pl.BlockSpec(memory_space=pltpu.MemorySpace.SMEM),
                  full_spec, full_spec, mask_spec, mask_spec, full_spec],
        out_specs=full_spec,
        compiler_params=pltpu.CompilerParams(
            dimension_semantics=("parallel", "parallel")),
    )(params,
      flat_full(warped_l), flat_full(warped_r),
      flat_mask(mask_l), flat_mask(mask_r),
      flat_full(refer))

    return out[:, :, :HW].reshape(N, C, H, W)


# ----------------------------------------------------------------------------
# Flow-based backward warp (gather) -- plain JAX glue.
# TODO(synk): grid_sample-style data-dependent gather has no clean Pallas TPU
# equivalent; the bilinear gather stays in plain JAX (fused by XLA under jit).
# ----------------------------------------------------------------------------
def _gather_nchw(x, yy, xx):
    N, C, H, W = x.shape
    flat = x.reshape(N, C, H * W)
    idx = (yy * W + xx).reshape(N, 1, H * W)
    idx = jnp.broadcast_to(idx, (N, C, H * W))
    return jnp.take_along_axis(flat, idx, axis=2).reshape(N, C, H, W)


def bilinear_warp(x, flo, grid):
    # x: (N,C,H,W)  flo, grid: (N,2,H,W) pixel coords (ch0 = x, ch1 = y)
    N, C, H, W = x.shape
    coords = grid + flo
    cx = jnp.clip(coords[:, 0], 0.0, W - 1.0)
    cy = jnp.clip(coords[:, 1], 0.0, H - 1.0)
    x0 = jnp.floor(cx)
    y0 = jnp.floor(cy)
    x0i = x0.astype(jnp.int32)
    y0i = y0.astype(jnp.int32)
    x1i = jnp.clip(x0i + 1, 0, W - 1)
    y1i = jnp.clip(y0i + 1, 0, H - 1)
    wx = (cx - x0)[:, None]
    wy = (cy - y0)[:, None]
    v00 = _gather_nchw(x, y0i, x0i)
    v01 = _gather_nchw(x, y0i, x1i)
    v10 = _gather_nchw(x, y1i, x0i)
    v11 = _gather_nchw(x, y1i, x1i)
    return (v00 * (1.0 - wx) * (1.0 - wy) + v01 * wx * (1.0 - wy)
            + v10 * (1.0 - wx) * wy + v11 * wx * wy)


# ----------------------------------------------------------------------------
# Module-level forward (jitted; is_encode/enhance are static)
# ----------------------------------------------------------------------------
@functools.partial(jax.jit, static_argnames=("is_encode", "enhance"))
def model_train_predict(x_l, flo_l, mask_l, x_r, flo_r, mask_r,
                        grid_up, grid_org, refer, alpha_level, rank,
                        *, is_encode=True, enhance=False):
    # Model_fir_warp: only the FIR (bilinear) warps feed the output; the
    # nearest-neighbour warps of the reference module are unused by forward's
    # return value and are dropped here (dead code).
    del grid_org, rank
    warped_l = bilinear_warp(x_l, flo_l, grid_up)
    warped_r = bilinear_warp(x_r, flo_r, grid_up)

    # TODO(synk): PostProcessing (enhance) network source is not provided in
    # the reference; the enhance_flag branch is not implemented.
    if (not is_encode) and enhance:
        raise NotImplementedError("enhance path (PostProcessing) unavailable")

    return fuse_pallas(warped_l, warped_r, mask_l, mask_r, refer,
                       alpha_level, is_encode)


# ----------------------------------------------------------------------------
if __name__ == "__main__":
    key = jax.random.PRNGKey(0)
    N, C, H, W = 2, 4, 16, 16

    ks = jax.random.split(key, 8)
    x_l = jax.random.normal(ks[0], (N, C, H, W), jnp.float32)
    x_r = jax.random.normal(ks[1], (N, C, H, W), jnp.float32)
    flo_l = jax.random.normal(ks[2], (N, 2, H, W), jnp.float32) * 2.0
    flo_r = jax.random.normal(ks[3], (N, 2, H, W), jnp.float32) * 2.0
    mask_l = jax.random.uniform(ks[4], (N, 1, H, W), jnp.float32)
    mask_r = jax.random.uniform(ks[5], (N, 1, H, W), jnp.float32)
    refer = jax.random.normal(ks[6], (N, C, H, W), jnp.float32)

    # base sampling grids in pixel coordinates (ch0 = x, ch1 = y)
    gy, gx = jnp.meshgrid(jnp.arange(H, dtype=jnp.float32),
                          jnp.arange(W, dtype=jnp.float32), indexing="ij")
    base_grid = jnp.stack([gx, gy], axis=0)                    # (2, H, W)
    grid_up = jnp.broadcast_to(base_grid, (N, 2, H, W))
    grid_org = jnp.broadcast_to(base_grid, (N, 2, H, W))

    alpha_level = 2.0
    rank = 1.0

    # encode branch
    H_enc = model_train_predict(x_l, flo_l, mask_l, x_r, flo_r, mask_r,
                                grid_up, grid_org, refer, alpha_level, rank,
                                is_encode=True, enhance=False)
    jax.block_until_ready(H_enc)

    # decode branch (enhance disabled)
    H_dec = model_train_predict(x_l, flo_l, mask_l, x_r, flo_r, mask_r,
                                grid_up, grid_org, refer, alpha_level, rank,
                                is_encode=False, enhance=False)
    jax.block_until_ready(H_dec)

    # pure-JAX reference check of the fused elementwise path
    wl = bilinear_warp(x_l, flo_l, grid_up)
    wr = bilinear_warp(x_r, flo_r, grid_up)
    fir_l = wl * jnp.broadcast_to(mask_l, wl.shape)
    fir_r = wr * jnp.broadcast_to(mask_r, wr.shape)
    predict1 = (fir_l + fir_r) / 2.0
    ref_enc = (refer - predict1) * alpha_level
    ref_dec = refer / alpha_level + predict1
    assert jnp.allclose(H_enc, ref_enc, atol=1e-5, rtol=1e-5)
    assert jnp.allclose(H_dec, ref_dec, atol=1e-5, rtol=1e-5)

    print("KERNEL_OK")
</pallas_src>

<mosaic_0001>
module attributes {stable_mosaic.version = 11 : i64} {
  func.func private @main(%arg0: i32) attributes {dimension_semantics = [#tpu.dimension_semantics<core_parallel>], iteration_bounds = array<i64: 2>, tpu.core_type = #tpu.core_type<sc_scalar_subcore>, window_params = []} {
    return
  }
}

module attributes {stable_mosaic.version = 11 : i64} {
  func.func private @main(%arg0: i32) attributes {dimension_semantics = [#tpu.dimension_semantics<core_parallel>], iteration_bounds = array<i64: 2>, tpu.core_type = #tpu.core_type<sc_scalar_subcore>, window_params = []} {
    return
  }
}

module attributes {stable_mosaic.version = 11 : i64} {
  func.func @_fuse_kernel(%arg0: i32, %arg1: i32, %arg2: memref<2xf32, #tpu.memory_space<smem>>, %arg3: memref<1x4x256xf32, #tpu.memory_space<vmem>>, %arg4: memref<1x4x256xf32, #tpu.memory_space<vmem>>, %arg5: memref<1x1x256xf32, #tpu.memory_space<vmem>>, %arg6: memref<1x1x256xf32, #tpu.memory_space<vmem>>, %arg7: memref<1x4x256xf32, #tpu.memory_space<vmem>>, %arg8: memref<1x4x256xf32, #tpu.memory_space<vmem>>) attributes {dimension_semantics = [#tpu.dimension_semantics<parallel>, #tpu.dimension_semantics<parallel>], iteration_bounds = array<i64: 2, 1>, scalar_prefetch = 0 : i64, scratch_operands = 0 : i64, tpu.core_type = #tpu.core_type<tc>, window_params = [{transform_indices = @transform_0, window_bounds = array<i64: 2>}, {transform_indices = @transform_1, window_bounds = array<i64: 1, 4, 256>}, {transform_indices = @transform_2, window_bounds = array<i64: 1, 4, 256>}, {transform_indices = @transform_3, window_bounds = array<i64: 1, 1, 256>}, {transform_indices = @transform_4, window_bounds = array<i64: 1, 1, 256>}, {transform_indices = @transform_5, window_bounds = array<i64: 1, 4, 256>}, {transform_indices = @transform_6, window_bounds = array<i64: 1, 4, 256>}]} {
    %c0 = arith.constant 0 : index
    %0 = memref.load %arg2[%c0] : memref<2xf32, #tpu.memory_space<smem>>
    %c0_0 = arith.constant 0 : index
    %c0_1 = arith.constant 0 : index
    %c0_2 = arith.constant 0 : index
    %1 = vector.load %arg5[%c0_0, %c0_1, %c0_2] : memref<1x1x256xf32, #tpu.memory_space<vmem>>, vector<1x1x256xf32>
    %c0_3 = arith.constant 0 : index
    %c0_4 = arith.constant 0 : index
    %c0_5 = arith.constant 0 : index
    %2 = vector.load %arg6[%c0_3, %c0_4, %c0_5] : memref<1x1x256xf32, #tpu.memory_space<vmem>>, vector<1x1x256xf32>
    %c0_6 = arith.constant 0 : index
    %c0_7 = arith.constant 0 : index
    %c0_8 = arith.constant 0 : index
    %3 = vector.load %arg3[%c0_6, %c0_7, %c0_8] : memref<1x4x256xf32, #tpu.memory_space<vmem>>, vector<1x4x256xf32>
    %4 = vector.broadcast %1 : vector<1x1x256xf32> to vector<1x4x256xf32>
    %5 = arith.mulf %3, %4 : vector<1x4x256xf32>
    %c0_9 = arith.constant 0 : index
    %c0_10 = arith.constant 0 : index
    %c0_11 = arith.constant 0 : index
    %6 = vector.load %arg4[%c0_9, %c0_10, %c0_11] : memref<1x4x256xf32, #tpu.memory_space<vmem>>, vector<1x4x256xf32>
    %7 = vector.broadcast %2 : vector<1x1x256xf32> to vector<1x4x256xf32>
    %8 = arith.mulf %6, %7 : vector<1x4x256xf32>
    %9 = arith.addf %5, %8 : vector<1x4x256xf32>
    %cst = arith.constant 5.000000e-01 : f32
    %10 = vector.broadcast %cst : f32 to vector<1x4x256xf32>
    %11 = arith.mulf %9, %10 : vector<1x4x256xf32>
    %c0_12 = arith.constant 0 : index
    %c0_13 = arith.constant 0 : index
    %c0_14 = arith.constant 0 : index
    %12 = vector.load %arg7[%c0_12, %c0_13, %c0_14] : memref<1x4x256xf32, #tpu.memory_space<vmem>>, vector<1x4x256xf32>
    %13 = arith.subf %12, %11 : vector<1x4x256xf32>
    %14 = vector.broadcast %0 : f32 to vector<1x4x256xf32>
    %15 = arith.mulf %13, %14 : vector<1x4x256xf32>
    %c0_15 = arith.constant 0 : index
    %c0_16 = arith.constant 0 : index
    %c0_17 = arith.constant 0 : index
    %16 = vector.load %arg8[%c0_15, %c0_16, %c0_17] : memref<1x4x256xf32, #tpu.memory_space<vmem>>, vector<1x4x256xf32>
    tpu.vector_store %arg8[%c0_15, %c0_16, %c0_17], %15 {strides = array<i32>} : memref<1x4x256xf32, #tpu.memory_space<vmem>>, vector<1x4x256xf32>,
    return
  }
  func.func @transform_0(%arg0: i32, %arg1: i32) -> i32 {
    %c0_i32 = arith.constant 0 : i32
    %c0_i32_0 = arith.constant 0 : i32
    return %c0_i32 : i32
  }
  func.func @transform_1(%arg0: i32, %arg1: i32) -> (i32, i32, i32) {
    %c0_i32 = arith.constant 0 : i32
    %c0_i32_0 = arith.constant 0 : i32
    return %arg0, %c0_i32, %arg1 : i32, i32, i32
  }
  func.func @transform_2(%arg0: i32, %arg1: i32) -> (i32, i32, i32) {
    %c0_i32 = arith.constant 0 : i32
    %c0_i32_0 = arith.constant 0 : i32
    return %arg0, %c0_i32, %arg1 : i32, i32, i32
  }
  func.func @transform_3(%arg0: i32, %arg1: i32) -> (i32, i32, i32) {
    %c0_i32 = arith.constant 0 : i32
    %c0_i32_0 = arith.constant 0 : i32
    return %arg0, %c0_i32, %arg1 : i32, i32, i32
  }
  func.func @transform_4(%arg0: i32, %arg1: i32) -> (i32, i32, i32) {
    %c0_i32 = arith.constant 0 : i32
    %c0_i32_0 = arith.constant 0 : i32
    return %arg0, %c0_i32, %arg1 : i32, i32, i32
  }
  func.func @transform_5(%arg0: i32, %arg1: i32) -> (i32, i32, i32) {
    %c0_i32 = arith.constant 0 : i32
    %c0_i32_0 = arith.constant 0 : i32
    return %arg0, %c0_i32, %arg1 : i32, i32, i32
  }
  func.func @transform_6(%arg0: i32, %arg1: i32) -> (i32, i32, i32) {
    %c0_i32 = arith.constant 0 : i32
    %c0_i32_0 = arith.constant 0 : i32
    return %arg0, %c0_i32, %arg1 : i32, i32, i32
  }
}

</mosaic_0001>

<bundles_post_ra>
// kernel: model_train_predict.1
= control target key start
LH: loop header
LB: loop body
LE: loop exit
PB: predicated region body
PF: predicated region fallthrough
CT: control target
= control target key end

     0   :  { %11 = vsyncpa [#allocation3], 0  ;;  %s781_s21 = smov 0   ;;  %s783_s22 = smov 0   ;;  %s858_s0 = inlined_call_operand.vmem [shape: f32[2], index: 0, kind: input, shape index: {}]   ;;  %s859_s1 = inlined_call_operand.vmem [shape: f32[2,4,256], index: 1, kind: input, shape index: {}]   ;;  %s860_s2 = inlined_call_operand.vmem [shape: f32[2,4,256], index: 2, kind: input, shape index: {}]   ;;  %s861_s3 = inlined_call_operand.vmem [shape: f32[2,1,256], index: 3, kind: input, shape index: {}]   ;;  %s862_s4 = inlined_call_operand.vmem [shape: f32[2,1,256], index: 4, kind: input, shape index: {}]   ;;  %s863_s5 = inlined_call_operand.vmem [shape: f32[2,4,256], index: 5, kind: input, shape index: {}]   ;;  %s864_s6 = inlined_call_operand.vmem [shape: f32[2,4,256], index: 6, kind: output, shape index: {}]  }
   0x1   :  { %s785_s23 = smov 0  }
   0x2 LB: > { %s644_s24 = sadd.s32 4294967295, %s743_s23   ;;  %s29_s25 = sadd.s32 1, %s739_s22  ;;  %s743_s23 = sphi %s785_s23, %s17_s23   ;;  %s739_s22 = sphi %s783_s22, %s868_s22   ;;  %s735_s21 = sphi %s781_s21, %s867_s21  }
   0x3   : > { %p31_p0 = scmp.ge.s32.totalorder %s29_s25, 2  ;;  %p646_p1 = scmp.ge.s32.totalorder %s743_s23, 1 }
   0x4   : > { %p223_p2 = scmp.lt.s32.totalorder %s743_s23, 3  ;;  %p806_p4 = scmp.eq.s32.totalorder %s644_s24, 0 }
   0x5   : > { %s870_s25 = smov (%p31_p0, %s29_s25), 0  ;;  %s236_s30 = sshll.u32 %s858_s0, 4  ;;  %s237_s30 = int_to_ptr.vmem [resolvable:$true] %s236_s30 }
   0x6   : > { %p802_p3 = pnand %p646_p1, %p223_p2  ;;  %s702_s7 = scalar_lea.vmem %s237_s30, 16 }
   0x7   : > { %p703_p7 = scmp.ne.s32.totalorder %s237_s30, %s702_s7  ;;  %p710_p11 = scmp.lt.s32.totalorder %s237_s30, %s237_s30 }
   0x8   : > { %p671_p5 = pneg %p802_p3  ;;  %p711_p12 = scmp.lt.s32.totalorder %s702_s7, %s702_s7 }
   0xa   : > { %p672_p6 = pnand %p806_p4, %p671_p5  ;;  %p712_p13 = por %p711_p12, %p710_p11 }
   0xc   : > { %p704_p8 = pneg %p672_p6 }
   0xe   : > { %p705_p9 = pnand %p704_p8, %p703_p7 }
  0x10   : > { %p706_p10 = pneg %p705_p9 }
  0x12   : > { %p713_p0 = pnand %p712_p13, %p706_p10 }
  0x14   : > { %716 = shalt.err (!%p713_p0)
}
  0x15   : > { %s745_s8 = smov [#allocation2]   ;;  %312 = sbr.rel (%p802_p3) target bundleno = 54 (0x36), region = 44 }
  0x16   : > { %674 = dma.vmem_to_smem (!%p672_p6), %s237_s30, 16, %s745_s8, [#allocation3]  }
  0x1c   : > { %730 = dma.done.wait (%p806_p4), [#allocation3], 16  }
  0x1d   : > { %732 = vsyncadd (%p806_p4), [#allocation3], 4294967280 }
  0x1e   : > { %318 = sfence }
  0x1f   : > { %p386_p1 = scmp.lt.s32.totalorder %s735_s21, 1  ;;  %v448_v0 = vlaneseq }
  0x21   : > { %s872_s21 = smov (!%p386_p1, %s735_s21), 1  ;;  %v449_v1 = vshrl.u32 %v448_v0, 7 }
  0x22   : > { %s825_s9 = sshll.u32 %s872_s21, 3  ;;  %s655_s10 = sshll.u32 %s872_s21, 1 }
  0x23   : > { %v450_v2 = vsub.s32 0, %v449_v1  ;;  %v454_v3 = vsub.s32 1, %v449_v1  ;;  %s393_s13 = scalar_lea.vmem %s859_s1, %s825_s9  ;;  %s403_s16 = scalar_lea.vmem %s860_s2, %s825_s9 }
  0x24   : > { %s412_s19 = scalar_lea.vmem %s861_s3, %s655_s10  ;;  %s421_s26 = scalar_lea.vmem %s862_s4, %s655_s10  ;;  %v446_v10 = vld [vmem:[%s393_s13] sm:$0xff] }
  0x25   : > { %v444_v4 = vld [vmem:[%s412_s19] sm:$0x3]  ;;  %s443_s21 = sld [smem:[#allocation2]]  ;;  %s431_s29 = scalar_lea.vmem %s863_s5, %s825_s9 }
  0x26   : > { %v445_v5 = vld [vmem:[%s421_s26] sm:$0x3]  ;;  %v451_v6 = vrot.slane %v444_v4, %v450_v2  ;;  %v455_v7 = vrot.slane %v444_v4, %v454_v3  ;;  %s441_s8 = scalar_lea.vmem %s864_s6, %s825_s9 }
  0x27   : > { %v464_v8 = vrot.slane %v445_v5, %v450_v2  ;;  %v468_v9 = vrot.slane %v445_v5, %v454_v3  ;;  %v459_v11 = vld [vmem:[%s403_s16] sm:$0xff] }
  0x28   : > { %v456_v12 = vcombine.low %v451_v6, %v455_v7  ;;  %v474_v17 = vld [vmem:[%s431_s29] sm:$0xff] }
  0x29   : > { %v469_v13 = vcombine.low %v464_v8, %v468_v9 }
  0x2a   : > { %v458_v14 = vmul.f32 %v456_v12, %v446_v10 }
  0x2b   : > { %v471_v15 = vmul.f32 %v469_v13, %v459_v11  ;;  %v476_v19 = vstv %s443_s21 }
  0x2d   : > { %v472_v16 = vadd.f32 %v471_v15, %v458_v14 }
  0x2f   : > { %v473_v18 = vmul.f32 0.5, %v472_v16 }
  0x31   : > { %v475_v20 = vsub.f32 %v474_v17, %v473_v18 }
  0x33   : > { %v477_v21 = vmul.f32 %v476_v19, %v475_v20 }
  0x35   : > { %478 = vst [vmem:[%s441_s8] sm:$0xff] %v477_v21 }
  0x36 PF: > { %s17_s23 = sadd.s32 1, %s743_s23   ;;  %s867_s21 = smov %s739_s22 }
  0x37   : > { %p14_p2 = scmp.ge.s32.totalorder %s17_s23, 4   ;;  %s868_s22 = smov %s870_s25 }
  0x39   :  { %16 = sbr.rel (!%p14_p2) target bundleno = 2 (0x2), region = 91 }
  0x40   :  { %509 = vsyncpa [#allocation3], 1 }
  0x41   :  { %511 = vsyncpa [#allocation3 + $0x1], 1 }

</bundles_post_ra>
